<compile_context>
chip_gen: v7x
topology: tpu7x:2x2x1
jax: 0.10.0
libtpu: 0.0.40
codegen_flags: <defaults>
</compile_context>

<pallas_src>
import functools
import numpy as np
import jax
import jax.numpy as jnp
from jax.experimental import pallas as pl
from jax.experimental.pallas import tpu as pltpu


# bf16 matmul inputs (f32 accumulation) — MXU peak on v6e/v7x, halved weight
# DMA everywhere.  Flip to jnp.float32 to bit-match an f32 PyTorch reference.
MATMUL_DTYPE = jnp.bfloat16

_GELU_C = 0.7978845608028654  # sqrt(2/pi)


# --------------------------- hardware-aware budgets --------------------------

@functools.lru_cache(maxsize=None)
def _vmem_capacity():
    """Physical VMEM bytes per TensorCore (64 MiB v7x, 128 MiB v5e/v6e)."""
    try:
        info = pltpu.get_tpu_info()
        for attr in ("vmem_capacity_bytes", "vmem_size_bytes", "vmem_bytes"):
            v = getattr(info, attr, None)
            if v:
                return int(v)
    except Exception:
        pass
    return 64 * 1024 * 1024  # conservative (v7x)


def _vmem_limit():
    # Raise the scoped-VMEM limit (defaults: 16 MiB v5e, 32 MiB v6e/v7x) while
    # leaving headroom vs. physical capacity.
    return int(_vmem_capacity() * 0.45)


# ----------------------------- in-kernel helpers ----------------------------

def _gelu(y):
    # TODO(synk): PyTorch nn.GELU() default is the exact erf form; the tanh
    # approximation is used here for guaranteed TPU (EUP) lowering.
    return 0.5 * y * (1.0 + jnp.tanh(_GELU_C * (y + 0.044715 * y * y * y)))


def _ln(x, g, b, eps):
    mean = jnp.mean(x, axis=-1, keepdims=True)
    xc = x - mean
    var = jnp.mean(xc * xc, axis=-1, keepdims=True)
    return xc * jax.lax.rsqrt(var + eps) * g + b


def _mm(a, b):
    return jnp.dot(a.astype(MATMUL_DTYPE), b.astype(MATMUL_DTYPE),
                   preferred_element_type=jnp.float32)


def _softmax_rows(s):
    s = s - jnp.max(s, axis=-1, keepdims=True)
    p = jnp.exp(s)
    return p * pl.reciprocal(jnp.sum(p, axis=-1, keepdims=True), approx=True)


# ------------------------------- tile pickers -------------------------------

def _row_plan(M):
    """Returns (tm, M_padded): row tile and the padded row count it divides."""
    if M <= 512:
        tm = ((M + 7) // 8) * 8          # single (8-aligned) tile
        return tm, tm
    tm = 512 if M >= 2048 else 256
    return tm, ((M + tm - 1) // tm) * tm


def _k_tile(K):
    # Tile the contraction dim only when it is big; 128-aligned tiles for MXU.
    if K <= 1024:
        return K
    for t in (512, 256, 128):
        if K % t == 0:
            return t
    return K


def _n_tile(N):
    # Tile the output dim so weight / out / acc blocks stay small in VMEM.
    if N <= 512:
        return N
    for t in (512, 384, 256, 128):
        if N % t == 0:
            return t
    return N


def _head_group(H, dh):
    # Smallest head group whose column width is a multiple of 128 (lane-dense).
    for hg in range(1, H + 1):
        if H % hg == 0 and (hg * dh) % 128 == 0:
            return hg
    return H


# ----------------------- fused linear (LN / bias / gelu / add) ---------------

def _linear_kernel(*refs, nk, activation, has_extra, has_ln, eps):
    it = iter(refs)
    x_ref = next(it)
    g_ref = bln_ref = None
    if has_ln:
        g_ref, bln_ref = next(it), next(it)
    w_ref, b_ref = next(it), next(it)
    e_ref = next(it) if has_extra else None
    o_ref = next(it)
    acc_ref = next(it) if nk > 1 else None

    xv = x_ref[...]
    if has_ln:
        xv = _ln(xv, g_ref[...], bln_ref[...], eps)
    part = _mm(xv, w_ref[...])

    def _finish(acc):
        y = acc + b_ref[...]
        if activation == "gelu":
            y = _gelu(y)
        if has_extra:
            y = y + e_ref[...]          # residual / pos-embed folded in epilogue
        o_ref[...] = y

    if nk == 1:
        _finish(part)
    else:
        kq = pl.program_id(2)

        @pl.when(kq == 0)
        def _():
            acc_ref[...] = jnp.zeros_like(acc_ref)

        acc_ref[...] += part

        @pl.when(kq == nk - 1)
        def _():
            _finish(acc_ref[...])


def linear(x, w, b, *, activation=None, extra=None, pre_ln=None, eps=1e-5):
    """y = [LN](x) @ w + b [+gelu] [+extra] ; x:[M,K], w:[K,N], b:[N].

    Grid = (M/tm, N/tn, K/tk).  M is zero-padded to a multiple of tm (result
    sliced back), N is tiled with tn a multiple of 128, and the K reduction is
    the innermost "arbitrary" axis with an f32 VMEM accumulator.  Row and
    column axes are "parallel" (megacore sharding on v7x)."""
    M, K = x.shape
    N = w.shape[1]
    tm, Mp = _row_plan(M)
    if Mp != M:
        x = jnp.pad(x, ((0, Mp - M), (0, 0)))
        if extra is not None:
            extra = jnp.pad(extra, ((0, Mp - M), (0, 0)))
    tk = K if pre_ln is not None else _k_tile(K)   # LN needs the full row
    nk = K // tk
    tn = _n_tile(N)
    nn = N // tn
    grid = (Mp // tm, nn, nk)

    in_specs = [pl.BlockSpec((tm, tk), lambda i, j, k: (i, k))]
    args = [x]
    if pre_ln is not None:
        g, bb = pre_ln
        in_specs += [pl.BlockSpec((1, K), lambda i, j, k: (0, 0)),
                     pl.BlockSpec((1, K), lambda i, j, k: (0, 0))]
        args += [g.reshape(1, K), bb.reshape(1, K)]
    in_specs += [pl.BlockSpec((tk, tn), lambda i, j, k: (k, j)),
                 pl.BlockSpec((1, tn), lambda i, j, k: (0, j))]
    args += [w, b.reshape(1, N)]
    if extra is not None:
        in_specs.append(pl.BlockSpec((tm, tn), lambda i, j, k: (i, j)))
        args.append(extra)

    kernel = functools.partial(
        _linear_kernel, nk=nk, activation=activation,
        has_extra=extra is not None, has_ln=pre_ln is not None, eps=eps)

    out = pl.pallas_call(
        kernel,
        out_shape=jax.ShapeDtypeStruct((Mp, N), jnp.float32),
        grid=grid,
        in_specs=in_specs,
        out_specs=pl.BlockSpec((tm, tn), lambda i, j, k: (i, j)),
        scratch_shapes=([pltpu.VMEM((tm, tn), jnp.float32)] if nk > 1 else []),
        compiler_params=pltpu.CompilerParams(
            dimension_semantics=("parallel", "parallel", "arbitrary"),
            vmem_limit_bytes=_vmem_limit()),
    )(*args)
    return out[:M] if Mp != M else out


# --------------------------------- layernorm ---------------------------------

def _layernorm_kernel(x_ref, g_ref, b_ref, o_ref, *, eps):
    o_ref[...] = _ln(x_ref[...], g_ref[...], b_ref[...], eps)


def layernorm(x, g, b, eps=1e-5):
    M, D = x.shape
    tm, Mp = _row_plan(M)
    xp = jnp.pad(x, ((0, Mp - M), (0, 0))) if Mp != M else x
    out = pl.pallas_call(
        functools.partial(_layernorm_kernel, eps=eps),
        out_shape=jax.ShapeDtypeStruct((Mp, D), jnp.float32),
        grid=(Mp // tm,),
        in_specs=[pl.BlockSpec((tm, D), lambda i: (i, 0)),
                  pl.BlockSpec((1, D), lambda i: (0, 0)),
                  pl.BlockSpec((1, D), lambda i: (0, 0))],
        out_specs=pl.BlockSpec((tm, D), lambda i: (i, 0)),
        compiler_params=pltpu.CompilerParams(
            dimension_semantics=("parallel",), vmem_limit_bytes=_vmem_limit()),
    )(xp, g.reshape(1, D), b.reshape(1, D))
    return out[:M] if Mp != M else out


# --------------------------------- attention ---------------------------------

def _attn_heads(q, k, v, o_ref, heads, dh, scale):
    # Softmax scale folded into q (L*dh multiply, not L*L).
    q = q * scale
    for h in range(heads):
        lo = h * dh
        qh, kh, vh = q[:, lo:lo + dh], k[:, lo:lo + dh], v[:, lo:lo + dh]
        s = jax.lax.dot_general(qh.astype(MATMUL_DTYPE), kh.astype(MATMUL_DTYPE),
                                (((1,), (1,)), ((), ())),
                                preferred_element_type=jnp.float32)
        p = _softmax_rows(s)
        o_ref[:, lo:lo + dh] = _mm(p, vh)


def _attn_group_kernel(q_ref, k_ref, v_ref, o_ref, *, heads, dh, scale):
    _attn_heads(q_ref[...], k_ref[...], v_ref[...], o_ref, heads, dh, scale)


def _attn_full_kernel(qkv_ref, o_ref, *, heads, dh, scale):
    qkv = qkv_ref[...]
    D = heads * dh
    _attn_heads(qkv[:, :D], qkv[:, D:2 * D], qkv[:, 2 * D:], o_ref,
                heads, dh, scale)


def attention_qkv(qkv, num_heads):
    """Multi-head softmax attention directly on the packed qkv activation.

    qkv: [B, L, 3D] with columns [q | k | v] (heads contiguous inside each).
    Returns [B, L, D] written lane-densely via index-mapped blocks — no
    reshape/transpose relayouts on the JAX side.
    # TODO(synk): for long sequences switch to a flash-style KV-tiled online
    # softmax (pattern P3); whole-L scores fit VMEM at ViT sizes."""
    B, L, D3 = qkv.shape
    D = D3 // 3
    dh = D // num_heads
    scale = dh ** -0.5

    if D % 128 == 0:
        hg = _head_group(num_heads, dh)      # heads per grid step
        gw = hg * dh                         # lane-dense column group (>=128)
        ng = D // gw
        kernel = functools.partial(_attn_group_kernel, heads=hg, dh=dh, scale=scale)
        return pl.pallas_call(
            kernel,
            out_shape=jax.ShapeDtypeStruct((B, L, D), jnp.float32),
            grid=(B, ng),
            in_specs=[
                pl.BlockSpec((None, L, gw), lambda b, g: (b, 0, g)),            # q
                pl.BlockSpec((None, L, gw), lambda b, g: (b, 0, ng + g)),       # k
                pl.BlockSpec((None, L, gw), lambda b, g: (b, 0, 2 * ng + g)),   # v
            ],
            out_specs=pl.BlockSpec((None, L, gw), lambda b, g: (b, 0, g)),
            compiler_params=pltpu.CompilerParams(
                dimension_semantics=("parallel", "parallel"),
                vmem_limit_bytes=_vmem_limit()),
        )(qkv, qkv, qkv)

    # Small / non-128-aligned widths: one grid step per batch element, slice
    # q/k/v from the full packed block inside the kernel.
    kernel = functools.partial(_attn_full_kernel, heads=num_heads, dh=dh, scale=scale)
    return pl.pallas_call(
        kernel,
        out_shape=jax.ShapeDtypeStruct((B, L, D), jnp.float32),
        grid=(B,),
        in_specs=[pl.BlockSpec((None, L, D3), lambda b: (b, 0, 0))],
        out_specs=pl.BlockSpec((None, L, D), lambda b: (b, 0, 0)),
        compiler_params=pltpu.CompilerParams(
            dimension_semantics=("parallel",), vmem_limit_bytes=_vmem_limit()),
    )(qkv)


# -------------------------- fused transformer block --------------------------

def _block_kernel(x_ref, ln1w_ref, ln1b_ref, qkvw_ref, qkvb_ref, pw_ref, pb_ref,
                  ln2w_ref, ln2b_ref, f1w_ref, f1b_ref, f2w_ref, f2b_ref,
                  o_ref, *, num_heads, eps):
    x = x_ref[...]                               # [L, D] (batch dim squeezed)
    L, D = x.shape
    dh = D // num_heads
    scale = dh ** -0.5

    # ---- LN1 + single qkv matmul (all in VMEM/vregs, never written to HBM) ----
    h = _ln(x, ln1w_ref[...], ln1b_ref[...], eps)
    qkv = _mm(h, qkvw_ref[...]) + qkvb_ref[...]
    q = qkv[:, :D] * scale                       # softmax scale folded into q
    k = qkv[:, D:2 * D]
    v = qkv[:, 2 * D:]

    # ---- multi-head attention; output projection accumulated per head so the
    #      per-head result never has to be re-concatenated on the lane axis ----
    # TODO(synk): a batched [H, L, dh] dot_general would amortize MXU pushes on
    # v6e/v7x, but the per-head loop avoids in-kernel (L,D)->(H,L,dh) relayouts.
    pwv = pw_ref[...]
    attn = jnp.zeros((L, D), jnp.float32)
    for hh in range(num_heads):
        lo = hh * dh
        qh, kh, vh = q[:, lo:lo + dh], k[:, lo:lo + dh], v[:, lo:lo + dh]
        s = jax.lax.dot_general(qh.astype(MATMUL_DTYPE), kh.astype(MATMUL_DTYPE),
                                (((1,), (1,)), ((), ())),
                                preferred_element_type=jnp.float32)
        p = _softmax_rows(s)
        oh = _mm(p, vh)                                      # [L, dh]
        attn = attn + _mm(oh, pwv[lo:lo + dh, :])            # [L, D]
    x = x + attn + pb_ref[...]                               # residual

    # ---- LN2 + MLP + residual ----
    m = _ln(x, ln2w_ref[...], ln2b_ref[...], eps)
    m = _gelu(_mm(m, f1w_ref[...]) + f1b_ref[...])
    m = _mm(m, f2w_ref[...]) + f2b_ref[...]
    o_ref[...] = x + m


def _transformer_block_fused(x, p):
    """One pallas_call per block; grid over batch, 'parallel' for megacore."""
    B, L, D = x.shape
    hidden = p['fc1_w'].shape[1]

    # TODO(synk): grid-invariant weight/bias specs could use
    # pipeline_mode=pl.Buffered(1) to drop their second pipeline buffer.
    def cspec(shape):
        return pl.BlockSpec(shape, lambda b: (0, 0))

    pairs = [
        (x, pl.BlockSpec((None, L, D), lambda b: (b, 0, 0))),
        (p['norm1_w'].reshape(1, D), cspec((1, D))),
        (p['norm1_b'].reshape(1, D), cspec((1, D))),
        (p['qkv_w'], cspec((D, 3 * D))),
        (p['qkv_b'].reshape(1, 3 * D), cspec((1, 3 * D))),
        (p['proj_w'], cspec((D, D))),
        (p['proj_b'].reshape(1, D), cspec((1, D))),
        (p['norm2_w'].reshape(1, D), cspec((1, D))),
        (p['norm2_b'].reshape(1, D), cspec((1, D))),
        (p['fc1_w'], cspec((D, hidden))),
        (p['fc1_b'].reshape(1, hidden), cspec((1, hidden))),
        (p['fc2_w'], cspec((hidden, D))),
        (p['fc2_b'].reshape(1, D), cspec((1, D))),
    ]
    args = [a for a, _ in pairs]
    in_specs = [s for _, s in pairs]

    return pl.pallas_call(
        functools.partial(_block_kernel, num_heads=p['num_heads'], eps=1e-5),
        out_shape=jax.ShapeDtypeStruct((B, L, D), jnp.float32),
        grid=(B,),
        in_specs=in_specs,
        out_specs=pl.BlockSpec((None, L, D), lambda b: (b, 0, 0)),
        compiler_params=pltpu.CompilerParams(
            dimension_semantics=("parallel",), vmem_limit_bytes=_vmem_limit()),
    )(*args)


def _transformer_block_unfused(x, p):
    """ViT-B/L-scale path: tiled/pipelined kernels with LN / residual folded
    into the matmuls and a transpose-free, lane-dense attention."""
    B, L, D = x.shape
    x2 = x.reshape(B * L, D)

    qkv = linear(x2, p['qkv_w'], p['qkv_b'],
                 pre_ln=(p['norm1_w'], p['norm1_b'])).reshape(B, L, 3 * D)
    o = attention_qkv(qkv, p['num_heads']).reshape(B * L, D)

    x2 = linear(o, p['proj_w'], p['proj_b'], extra=x2)                # + residual
    h1 = linear(x2, p['fc1_w'], p['fc1_b'], activation="gelu",
                pre_ln=(p['norm2_w'], p['norm2_b']))                  # LN2 fused
    x2 = linear(h1, p['fc2_w'], p['fc2_b'], extra=x2)                 # + residual
    return x2.reshape(B, L, D)


def transformer_block(x, p):
    B, L, D = x.shape
    hidden = p['fc1_w'].shape[1]
    wsize = jnp.dtype(MATMUL_DTYPE).itemsize
    # Rough per-grid-step resident bytes for the fully fused kernel:
    # double-buffered weights/biases + f32 working set.
    weights = (3 * D * D + D * D + 2 * D * hidden) * wsize + (11 * D + hidden) * 4
    acts = 4 * L * (6 * D + hidden) + 4 * L * L
    fused_bytes = 2 * weights + 2 * acts
    # Generation-aware cutoff (~40% of physical VMEM: ~25 MiB v7x, ~51 MiB v5e/v6e).
    if fused_bytes < int(_vmem_capacity() * 0.4):
        return _transformer_block_fused(x, p)
    return _transformer_block_unfused(x, p)


# ------------------------- sin-cos positional embed --------------------------

def _sincos_1d(embed_dim, pos):
    omega = np.arange(embed_dim // 2, dtype=np.float32)
    omega /= embed_dim / 2.0
    omega = 1.0 / 10000 ** omega
    out = np.einsum('m,d->md', pos.reshape(-1).astype(np.float32), omega)
    return np.concatenate([np.sin(out), np.cos(out)], axis=1)


def get_2d_sincos_pos_embed(embed_dim, grid_size, cls_token=False):
    grid_h = np.arange(grid_size, dtype=np.float32)
    grid_w = np.arange(grid_size, dtype=np.float32)
    grid = np.meshgrid(grid_w, grid_h)
    grid = np.stack(grid, axis=0).reshape([2, 1, grid_size, grid_size])
    emb_h = _sincos_1d(embed_dim // 2, grid[0])
    emb_w = _sincos_1d(embed_dim // 2, grid[1])
    pos = np.concatenate([emb_h, emb_w], axis=1)
    if cls_token:
        pos = np.concatenate([np.zeros([1, embed_dim], dtype=np.float32), pos], axis=0)
    return pos.astype(np.float32)


# ------------------------------- parameters ----------------------------------

def _xavier(key, fan_in, fan_out):
    lim = float(np.sqrt(6.0 / (fan_in + fan_out)))
    return jax.random.uniform(key, (fan_in, fan_out), jnp.float32, -lim, lim)


def init_block_params(key, dim, heads, mlp_ratio):
    hidden = int(dim * mlp_ratio)
    ks = jax.random.split(key, 4)
    wd = MATMUL_DTYPE   # matmul weights stored once in the matmul dtype
    return dict(
        num_heads=heads,
        norm1_w=jnp.ones((dim,), jnp.float32), norm1_b=jnp.zeros((dim,), jnp.float32),
        # qkv pre-concatenated at init (no per-call concat in HBM).
        qkv_w=_xavier(ks[0], dim, 3 * dim).astype(wd),
        qkv_b=jnp.zeros((3 * dim,), jnp.float32),
        proj_w=_xavier(ks[1], dim, dim).astype(wd),
        proj_b=jnp.zeros((dim,), jnp.float32),
        norm2_w=jnp.ones((dim,), jnp.float32), norm2_b=jnp.zeros((dim,), jnp.float32),
        fc1_w=_xavier(ks[2], dim, hidden).astype(wd),
        fc1_b=jnp.zeros((hidden,), jnp.float32),
        fc2_w=_xavier(ks[3], hidden, dim).astype(wd),
        fc2_b=jnp.zeros((dim,), jnp.float32),
    )


def init_params(key, *, img_size, patch_size, in_chans, enc_dim, enc_depth, enc_heads,
                dec_dim, dec_depth, dec_heads, mlp_ratio):
    num_patches = (img_size // patch_size) ** 2
    keys = iter(jax.random.split(key, 5 + enc_depth + dec_depth))
    wd = MATMUL_DTYPE
    return dict(
        patch_size=patch_size,
        patch_w=_xavier(next(keys), in_chans * patch_size * patch_size, enc_dim).astype(wd),
        patch_b=jnp.zeros((enc_dim,), jnp.float32),
        cls_token=0.02 * jax.random.normal(next(keys), (1, 1, enc_dim), jnp.float32),
        pos_embed=jnp.asarray(
            get_2d_sincos_pos_embed(enc_dim, int(num_patches ** 0.5), cls_token=True))[None],
        enc_blocks=[init_block_params(next(keys), enc_dim, enc_heads, mlp_ratio)
                    for _ in range(enc_depth)],
        enc_norm_w=jnp.ones((enc_dim,), jnp.float32),
        enc_norm_b=jnp.zeros((enc_dim,), jnp.float32),
        dec_embed_w=_xavier(next(keys), enc_dim, dec_dim).astype(wd),
        dec_embed_b=jnp.zeros((dec_dim,), jnp.float32),
        mask_token=0.02 * jax.random.normal(next(keys), (1, 1, dec_dim), jnp.float32),
        dec_pos_embed=jnp.asarray(
            get_2d_sincos_pos_embed(dec_dim, int(num_patches ** 0.5), cls_token=False))[None],
        dec_blocks=[init_block_params(next(keys), dec_dim, dec_heads, mlp_ratio)
                    for _ in range(dec_depth)],
        dec_norm_w=jnp.ones((dec_dim,), jnp.float32),
        dec_norm_b=jnp.zeros((dec_dim,), jnp.float32),
        pred_w=_xavier(next(keys), dec_dim, patch_size * patch_size * in_chans).astype(wd),
        pred_b=jnp.zeros((patch_size * patch_size * in_chans,), jnp.float32),
    )


# ------------------------------- MAE forward ----------------------------------

def mae_forward(params, x, noise_key, mask_ratio=0.75):
    # x is NCHW [B, C, H, W] exactly like the PyTorch module.
    B, C, H, W = x.shape
    p = params['patch_size']
    h, w = H // p, W // p
    L = h * w
    D_enc = params['patch_w'].shape[1]
    D_dec = params['dec_embed_w'].shape[1]

    # ---- patch embed (stride-p conv == matmul); pos-embed add fused in-kernel ----
    # TODO(synk): the patchify 6-D reshape/transpose is an XLA relayout; folding
    # it into the patch-embed kernel via index-mapped BlockSpecs (or NHWC input)
    # would remove one full-image HBM pass at real image sizes.
    patches = x.reshape(B, C, h, p, w, p).transpose(0, 2, 4, 1, 3, 5).reshape(B * L, C * p * p)
    pos = jnp.broadcast_to(params['pos_embed'][:, 1:, :], (B, L, D_enc)).reshape(B * L, D_enc)
    tok = linear(patches, params['patch_w'], params['patch_b'], extra=pos).reshape(B, L, D_enc)

    # ---- random masking (same semantics as torch; different RNG stream) ----
    len_keep = int(L * (1 - mask_ratio))
    noise = jax.random.uniform(noise_key, (B, L))
    ids_shuffle = jnp.argsort(noise, axis=1)
    ids_restore = jnp.argsort(ids_shuffle, axis=1)
    ids_keep = ids_shuffle[:, :len_keep]
    kept = jnp.take_along_axis(tok, ids_keep[:, :, None], axis=1)
    mask = jnp.ones((B, L), jnp.float32).at[:, :len_keep].set(0.0)
    mask = jnp.take_along_axis(mask, ids_restore, axis=1)

    # ---- cls token + encoder blocks (one fused Pallas kernel per block) ----
    cls = params['cls_token'] + params['pos_embed'][:, :1, :]
    xe = jnp.concatenate([jnp.broadcast_to(cls, (B, 1, D_enc)), kept], axis=1)
    for blk in params['enc_blocks']:
        xe = transformer_block(xe, blk)
    latent = layernorm(xe.reshape(-1, D_enc),
                       params['enc_norm_w'], params['enc_norm_b']).reshape(B, -1, D_enc)

    # ---- decoder ----
    n_vis = latent.shape[1] - 1
    xd = linear(latent[:, 1:, :].reshape(-1, D_enc),
                params['dec_embed_w'], params['dec_embed_b']).reshape(B, n_vis, D_dec)
    mask_tokens = jnp.broadcast_to(params['mask_token'], (B, L - n_vis, D_dec))
    x_ = jnp.concatenate([xd, mask_tokens], axis=1)
    x_ = jnp.take_along_axis(x_, ids_restore[:, :, None], axis=1) + params['dec_pos_embed']
    for blk in params['dec_blocks']:
        x_ = transformer_block(x_, blk)
    # decoder_norm + decoder_pred fused into a single LN+matmul kernel
    pred = linear(x_.reshape(-1, D_dec), params['pred_w'], params['pred_b'],
                  pre_ln=(params['dec_norm_w'], params['dec_norm_b'])).reshape(B, L, p * p * C)

    return latent, pred, mask


# ----------------------------------- main --------------------------------------

if __name__ == "__main__":
    key = jax.random.PRNGKey(0)
    pkey, xkey, mkey, bkey = jax.random.split(key, 4)

    # Small config consistent with the module: img=16, patch=4 -> 16 patches.
    params = init_params(
        pkey, img_size=16, patch_size=4, in_chans=3,
        enc_dim=32, enc_depth=2, enc_heads=4,
        dec_dim=32, dec_depth=2, dec_heads=4, mlp_ratio=4.0)

    x = jax.random.normal(xkey, (2, 3, 16, 16), jnp.float32)  # NCHW

    latent, pred, mask = mae_forward(params, x, mkey, mask_ratio=0.75)
    jax.block_until_ready((latent, pred, mask))

    assert latent.shape == (2, 5, 32)    # [B, 1 + len_keep, enc_dim]
    assert pred.shape == (2, 16, 48)     # [B, num_patches, p*p*C]
    assert mask.shape == (2, 16)         # [B, num_patches]
    assert bool(jnp.all(jnp.isfinite(latent))) and bool(jnp.all(jnp.isfinite(pred)))

    # Cross-check the scalable (tiled/pipelined, unfused) block path against the
    # fully fused block kernel at a lane-dense width (exercises N-tiling, the
    # grouped lane-dense attention, and the M-padding logic).
    k1, k2 = jax.random.split(bkey)
    blk = init_block_params(k1, dim=256, heads=4, mlp_ratio=4.0)
    xb = jax.random.normal(k2, (2, 64, 256), jnp.float32)
    y_fused = _transformer_block_fused(xb, blk)
    y_tiled = _transformer_block_unfused(xb, blk)
    jax.block_until_ready((y_fused, y_tiled))
    assert y_fused.shape == (2, 64, 256)
    max_err = float(jnp.max(jnp.abs(y_fused - y_tiled)))
    assert max_err < 5e-2, f"fused vs tiled transformer block mismatch: {max_err}"

    print("KERNEL_OK")
</pallas_src>

<mosaic_0001>
module attributes {stable_mosaic.version = 11 : i64} {
  func.func @_linear_kernel(%arg0: i32, %arg1: i32, %arg2: i32, %arg3: memref<32x48xf32, #tpu.memory_space<vmem>>, %arg4: memref<48x32xbf16, #tpu.memory_space<vmem>>, %arg5: memref<1x32xf32, #tpu.memory_space<vmem>>, %arg6: memref<32x32xf32, #tpu.memory_space<vmem>>, %arg7: memref<32x32xf32, #tpu.memory_space<vmem>>) attributes {dimension_semantics = [#tpu.dimension_semantics<parallel>, #tpu.dimension_semantics<parallel>, #tpu.dimension_semantics<arbitrary>], iteration_bounds = array<i64: 1, 1, 1>, scalar_prefetch = 0 : i64, scratch_operands = 0 : i64, tpu.core_type = #tpu.core_type<tc>, window_params = [{transform_indices = @transform_0, window_bounds = array<i64: 32, 48>}, {transform_indices = @transform_1, window_bounds = array<i64: 48, 32>}, {transform_indices = @transform_2, window_bounds = array<i64: 1, 32>}, {transform_indices = @transform_3, window_bounds = array<i64: 32, 32>}, {transform_indices = @transform_4, window_bounds = array<i64: 32, 32>}]} {
    %c0 = arith.constant 0 : index
    %c0_0 = arith.constant 0 : index
    %0 = vector.load %arg3[%c0, %c0_0] : memref<32x48xf32, #tpu.memory_space<vmem>>, vector<32x48xf32>
    %c0_1 = arith.constant 0 : index
    %c0_2 = arith.constant 0 : index
    %1 = vector.load %arg4[%c0_1, %c0_2] : memref<48x32xbf16, #tpu.memory_space<vmem>>, vector<48x32xbf16>
    %2 = arith.truncf %0 : vector<32x48xf32> to vector<32x48xbf16>
    %cst = arith.constant dense<0.000000e+00> : vector<32x32xf32>
    %3 = tpu.matmul %2, %1, %cst {dimension_numbers = #tpu.dot_dimension_numbers<[1], [0], [0], [1], [0, 0, 1, 1], [], []>} : vector<32x48xbf16>, vector<48x32xbf16>, vector<32x32xf32> -> vector<32x32xf32>
    %c0_3 = arith.constant 0 : index
    %c0_4 = arith.constant 0 : index
    %4 = vector.load %arg5[%c0_3, %c0_4] : memref<1x32xf32, #tpu.memory_space<vmem>>, vector<1x32xf32>
    %5 = vector.broadcast %4 : vector<1x32xf32> to vector<32x32xf32>
    %6 = arith.addf %3, %5 : vector<32x32xf32>
    %c0_5 = arith.constant 0 : index
    %c0_6 = arith.constant 0 : index
    %7 = vector.load %arg6[%c0_5, %c0_6] : memref<32x32xf32, #tpu.memory_space<vmem>>, vector<32x32xf32>
    %8 = arith.addf %6, %7 : vector<32x32xf32>
    %c0_7 = arith.constant 0 : index
    %c0_8 = arith.constant 0 : index
    %9 = vector.load %arg7[%c0_7, %c0_8] : memref<32x32xf32, #tpu.memory_space<vmem>>, vector<32x32xf32>
    tpu.vector_store %arg7[%c0_7, %c0_8], %8 {strides = array<i32>} : memref<32x32xf32, #tpu.memory_space<vmem>>, vector<32x32xf32>,
    return
  }
  func.func @transform_0(%arg0: i32, %arg1: i32, %arg2: i32) -> (i32, i32) {
    %c0_i32 = arith.constant 0 : i32
    return %arg0, %arg2 : i32, i32
  }
  func.func @transform_1(%arg0: i32, %arg1: i32, %arg2: i32) -> (i32, i32) {
    %c0_i32 = arith.constant 0 : i32
    return %arg2, %arg1 : i32, i32
  }
  func.func @transform_2(%arg0: i32, %arg1: i32, %arg2: i32) -> (i32, i32) {
    %c0_i32 = arith.constant 0 : i32
    %c0_i32_0 = arith.constant 0 : i32
    return %c0_i32, %arg1 : i32, i32
  }
  func.func @transform_3(%arg0: i32, %arg1: i32, %arg2: i32) -> (i32, i32) {
    %c0_i32 = arith.constant 0 : i32
    return %arg0, %arg1 : i32, i32
  }
  func.func @transform_4(%arg0: i32, %arg1: i32, %arg2: i32) -> (i32, i32) {
    %c0_i32 = arith.constant 0 : i32
    return %arg0, %arg1 : i32, i32
  }
}

</mosaic_0001>

<bundles_post_ra>
// kernel: tpu_custom_call.1
= control target key start
LH: loop header
LB: loop body
LE: loop exit
PB: predicated region body
PF: predicated region fallthrough
CT: control target
= control target key end

     0   :  { %9 = vsyncpa [#allocation3], 0  ;;  %s319_s0 = inlined_call_operand.vmem [shape: f32[32,48], index: 0, kind: input, shape index: {}]   ;;  %s320_s1 = inlined_call_operand.vmem [shape: bf16[48,32], index: 1, kind: input, shape index: {}]   ;;  %s321_s2 = inlined_call_operand.vmem [shape: f32[1,32], index: 2, kind: input, shape index: {}]   ;;  %s322_s3 = inlined_call_operand.hbm [shape: f32[32,32], index: 3, kind: input, shape index: {}]   ;;  %s323_s4 = inlined_call_operand.hbm [shape: f32[32,32], index: 4, kind: output, shape index: {}]  }
   0x1   :  { %10 = vsyncpa [#allocation4], 0  ;;  %s232_s15 = smov [#allocation2]   ;;  %s184_s19 = scalar_lea.hbm %s322_s3, 512 }
   0x2   :  { %s22_s16 = sshll.u32 %s232_s15, 4  ;;  %p185_p0 = scmp.ne.s32.totalorder %s322_s3, %s184_s19  ;;  %s23_s16 = int_to_ptr.vmem [resolvable:$true] %s22_s16 }
   0x3   :  { %p188_p1 = scmp.lt.u32.totalorder %s184_s19, %s322_s3 }
   0x5   :  { %p190_p2 = pnand %p188_p1, %p185_p0 }
   0x7   :  { %193 = shalt.err (!%p190_p2)
}
   0x8   :  { %s194_s24 = scalar_lea.vmem %s23_s16, 512  ;;  %p199_p4 = scmp.lt.s32.totalorder %s23_s16, %s23_s16 }
   0x9   :  { %p195_p3 = scmp.ne.s32.totalorder %s23_s16, %s194_s24  ;;  %p200_p5 = scmp.lt.s32.totalorder %s194_s24, %s194_s24 }
   0xb   :  { %p201_p6 = por %p200_p5, %p199_p4 }
   0xd   :  { %p202_p7 = pnand %p201_p6, %p195_p3 }
   0xf   :  { %205 = shalt.err (!%p202_p7)
}
  0x10   :  { %s233_s25 = smov 128   ;;  %s234_s26 = smov 8  }
  0x11   :  { %28 = dma.hbm_to_vmem [thread:$0]  %s322_s3, 512, %s23_s16, [#allocation3], %s233_s25, %s233_s25, %s234_s26  }
  0x12   :  { %228 = dma.done.wait [#allocation3], 512  }
  0x13   :  { %229 = vsyncadd [#allocation3], 4294966784  ;;  %v181_v0 = vld [vmem:[%s320_s1] sm:$0xff]   ;;  %v182_v1 = vld [vmem:[%s320_s1 + $0x8] sm:$0xff]   ;;  %vm70_vm0 = vcmask 392192   ;;  %vm134_vm1 = vcmask 261120  }
  0x14   :  { %167 = vmatprep.subr.bf16.mxu0 %v181_v0  ;;  %v33_v2 = vld [vmem:[%s319_s0] sm:$0xff]  ;;  %v34_v3 = vld [vmem:[%s319_s0 + $0x8] sm:$0xff]  ;;  %v183_v4 = vld [vmem:[%s320_s1 + $0x10] sm:$0xff]  }
  0x15   :  { %168 = vmatpush3.bf16.msra.mxu0 %v181_v0  ;;  %v43_v5 = vpack.c.bf16 %v34_v3, %v33_v2  ;;  %v35_v6 = vld [vmem:[%s319_s0 + $0x10] sm:$0xff]  ;;  %v36_v7 = vld [vmem:[%s319_s0 + $0x18] sm:$0xff]  ;;  %v156_v9 = vld [vmem:[%s321_s2] ss:$0 sm:$0xff]  ;;  %s235_s0 = smov [#allocation5]  }
  0x16   :  { %169 = vmatprep.subr.bf16.mxu0 %v182_v1  ;;  %v44_v8 = vpack.c.bf16 %v36_v7, %v35_v6  ;;  %v128_v11 = vld [vmem:[#allocation2 + $0x10] sm:$0xff]  ;;  %v126_v14 = vld [vmem:[#allocation2] sm:$0xff]  ;;  %v129_v17 = vld [vmem:[#allocation2 + $0x18] sm:$0xff]  ;;  %s144_s1 = sshll.u32 %s235_s0, 4  ;;  %s145_s1 = int_to_ptr.vmem [resolvable:$true] %s144_s1 }
  0x17   :  { %173 = vmatprep.mubr.msk.bf16.mxu0 %vm70_vm0, %v43_v5  ;;  %v127_v21 = vld [vmem:[#allocation2 + $0x8] sm:$0xff]  ;;  %s206_s2 = scalar_lea.vmem %s145_s1, 512  ;;  %p211_p9 = scmp.lt.s32.totalorder %s145_s1, %s145_s1 }
  0x18   :  { %p207_p8 = scmp.ne.s32.totalorder %s145_s1, %s206_s2  ;;  %p212_p10 = scmp.lt.s32.totalorder %s206_s2, %s206_s2 }
  0x19   :  { %170 = vmatpush3.bf16.msra.mxu0 %v182_v1 }
  0x1a   :  { %171 = vmatprep.subr.bf16.mxu0 %v183_v4  ;;  %p213_p11 = por %p212_p10, %p211_p9 }
  0x1c   :  { %p214_p12 = pnand %p213_p11, %p207_p8 }
  0x1d   :  { %172 = vmatpush3.bf16.msra.mxu0 %v183_v4 }
  0x20   :  { %174 = vmatmul.mubr.msk.bf16.vlgmr.msra.gmra.mrb[0].mxu0 %vm70_vm0, %v44_v8 }
  0xf3   :  { %v175_v10 = vpop.f32.mrb[0].mxu0 }
  0xf4   :  { %v120_v12 = vadd.f32 %v175_v10, %v156_v9  ;;  %v111_v13 = vpop.f32.mrb[1].mxu0 }
  0xf5   :  { %v112_v15 = vadd.f32 %v156_v9, %v111_v13  ;;  %v176_v16 = vpop.f32.mrb[2].mxu0 }
  0xf6   :  { %v132_v18 = vadd.f32 %v128_v11, %v120_v12  ;;  %v123_v19 = vadd.f32 %v176_v16, %v156_v9  ;;  %v114_v20 = vpop.f32.mrb[3].mxu0 }
  0xf7   :  { %v130_v22 = vadd.f32 %v126_v14, %v112_v15  ;;  %v115_v23 = vadd.f32 %v156_v9, %v114_v20 }
  0xf8   :  { %137 = vst.msk [vmem:[#allocation5 + $0x10] sm:$0xff] %vm134_vm1, %v132_v18  ;;  %v133_v24 = vadd.f32 %v129_v17, %v123_v19 }
  0xf9   :  { %135 = vst.msk [vmem:[#allocation5] sm:$0xff] %vm134_vm1, %v130_v22  ;;  %v131_v25 = vadd.f32 %v127_v21, %v115_v23 }
  0xfa   :  { %138 = vst.msk [vmem:[#allocation5 + $0x18] sm:$0xff] %vm134_vm1, %v133_v24 }
  0xfb   :  { %136 = vst.msk [vmem:[#allocation5 + $0x8] sm:$0xff] %vm134_vm1, %v131_v25 }
  0xfc   :  { %217 = shalt.err (!%p214_p12)
}
  0xfd   :  { %s218_s20 = scalar_lea.hbm %s323_s4, 512 }
  0xfe   :  { %p219_p13 = scmp.ne.s32.totalorder %s323_s4, %s218_s20  ;;  %p222_p0 = scmp.lt.u32.totalorder %s218_s20, %s323_s4 }
 0x100   :  { %p224_p1 = pnand %p222_p0, %p219_p13 }
 0x102   :  { %227 = shalt.err (!%p224_p1)
}
 0x103   :  { %150 = dma.vmem_to_hbm [thread:$0]  %s145_s1, 512, %s323_s4, [#allocation4], %s233_s25, %s233_s25, %s234_s26  }
 0x104   :  { %230 = dma.done.wait [#allocation4], 512  }
 0x105   :  { %231 = vsyncadd [#allocation4], 4294966784 }
 0x106   :  { %154 = vsyncpa [#allocation3], 1 }
 0x107   :  { %155 = vsyncpa [#allocation4], 1 }

</bundles_post_ra>
